<compile_context>
chip_gen: v6e
topology: v6e:2x2x1
jax: 0.10.0
libtpu: 0.0.40
codegen_flags: <defaults>
</compile_context>

<pallas_src>
import numpy as np

import jax
import jax.numpy as jnp
from jax.experimental import pallas as pl
from jax.experimental.pallas import tpu as pltpu


_VMEM_BUDGET = 24 * 1024 * 1024     # conservative across v5e/v6e (32 MiB scoped
                                    # default) and v7x (64 MiB physical)
_VMEM_LIMIT = 32 * 1024 * 1024


def _make_single_pass_kernel(eps):
    """Whole slab resident in VMEM: stats + normalize in one shot (x read once)."""

    def kernel(g_ref,       # VMEM (NC, 1)  f32 gamma per (n, c) row
               b_ref,       # VMEM (NC, 1)  f32 beta  per (n, c) row
               csum_ref,    # VMEM (C, NC)  f32 channel-sum matrix (1/(N*H*W) folded)
               bcast_ref,   # VMEM (NC, C)  f32 channel->row broadcast matrix
               x_ref,       # VMEM (NC, HWp) input (native dtype)
               out_ref):    # VMEM (NC, HWp) output
        x = x_ref[...].astype(jnp.float32)
        s = jnp.sum(x, axis=1, keepdims=True)               # (NC, 1) per-row sum
        sq = jnp.sum(x * x, axis=1, keepdims=True)          # (NC, 1) per-row sumsq
        # per-channel stats on the MXU, then broadcast back to every (n, c) row
        mean = jnp.dot(bcast_ref[...],
                       jnp.dot(csum_ref[...], s, preferred_element_type=jnp.float32),
                       preferred_element_type=jnp.float32)  # (NC, 1) E[x]
        ex2 = jnp.dot(bcast_ref[...],
                      jnp.dot(csum_ref[...], sq, preferred_element_type=jnp.float32),
                      preferred_element_type=jnp.float32)   # (NC, 1) E[x^2]
        # NOTE: E[x^2] - E[x]^2 in f32; fine for typical activation ranges.
        var = ex2 - mean * mean
        inv = jax.lax.rsqrt(var + eps)
        scale = g_ref[...] * inv
        shift = b_ref[...] - mean * scale
        out_ref[...] = (x * scale + shift).astype(out_ref.dtype)

    return kernel


def _make_tiled_kernel(eps):
    """Two-phase grid: phase 0 accumulates stats, phase 1 applies fused FMA."""

    def kernel(g_ref,       # VMEM (NC, 1)   resident
               b_ref,       # VMEM (NC, 1)   resident
               csum_ref,    # VMEM (C, NC)   resident
               bcast_ref,   # VMEM (NC, C)   resident
               x_ref,       # VMEM (NC, TL)  input block (native dtype)
               out_ref,     # VMEM (NC, TL)  output block
               sum_scr,     # VMEM (NC, 1)   running per-row sum
               sq_scr,      # VMEM (NC, 1)   running per-row sum of squares
               scale_scr,   # VMEM (NC, 1)   fused per-row scale
               shift_scr):  # VMEM (NC, 1)   fused per-row shift
        p = pl.program_id(0)       # 0 = stats pass, 1 = normalize pass
        blk = pl.program_id(1)     # lane (spatial) block index
        nblk = pl.num_programs(1)

        @pl.when(jnp.logical_and(p == 0, blk == 0))
        def _init():
            sum_scr[...] = jnp.zeros_like(sum_scr)
            sq_scr[...] = jnp.zeros_like(sq_scr)

        @pl.when(p == 0)
        def _accumulate():
            xb = x_ref[...].astype(jnp.float32)                   # (NC, TL)
            sum_scr[...] += jnp.sum(xb, axis=1, keepdims=True)    # lane reduce
            sq_scr[...] += jnp.sum(xb * xb, axis=1, keepdims=True)

        # Finalize at the tail of phase 0 so the matmuls + scale/shift build
        # hide under the phase-transition DMA instead of stalling the first
        # normalize block.
        @pl.when(jnp.logical_and(p == 0, blk == nblk - 1))
        def _finalize():
            mean = jnp.dot(bcast_ref[...],
                           jnp.dot(csum_ref[...], sum_scr[...],
                                   preferred_element_type=jnp.float32),
                           preferred_element_type=jnp.float32)    # (NC, 1)
            ex2 = jnp.dot(bcast_ref[...],
                          jnp.dot(csum_ref[...], sq_scr[...],
                                  preferred_element_type=jnp.float32),
                          preferred_element_type=jnp.float32)     # (NC, 1)
            var = ex2 - mean * mean          # biased batch variance
            inv = jax.lax.rsqrt(var + eps)
            scale = g_ref[...] * inv
            scale_scr[...] = scale
            shift_scr[...] = b_ref[...] - mean * scale

        @pl.when(p == 1)
        def _normalize():
            # Single FMA per element, full-vreg, lane-dense store.
            out_ref[...] = (x_ref[...].astype(jnp.float32) * scale_scr[...]
                            + shift_scr[...]).astype(out_ref.dtype)

    return kernel


def conditional_batch_norm_2d(x_nchw, class_id, gamma_weight, beta_weight,
                              eps=1e-5, out_dtype=jnp.float32,
                              lane_tile=None, force_tiled=False):
    """Training-mode forward of ConditionalBatchNorm2d.

    x_nchw:       (N, C, H, W) float/bf16 (kept in native dtype in HBM)
    class_id:     (N,) or (N, 1) int
    gamma_weight: (num_class, C) float   -- gamma_embed.weight
    beta_weight:  (num_class, C) float   -- beta_embed.weight
    """
    n, c, h, w = x_nchw.shape
    hw = h * w
    nc = n * c

    # Lane-dense slab: rows = (n, c) pairs (sublanes), lanes = spatial.
    # Native dtype is preserved; upcast happens per block inside the kernel.
    x2d = x_nchw.reshape(nc, hw)
    x_bytes = jnp.dtype(x2d.dtype).itemsize
    out_bytes = jnp.dtype(out_dtype).itemsize

    # Embedding gather in the wrapper (a few KB; avoids SMEM table blow-up and
    # the unrolled in-kernel splat loop).
    cls = jnp.reshape(class_id, (-1,)).astype(jnp.int32)
    g_col = jnp.take(gamma_weight.astype(jnp.float32), cls, axis=0).reshape(nc, 1)
    b_col = jnp.take(beta_weight.astype(jnp.float32), cls, axis=0).reshape(nc, 1)

    # Decomposed channel-averaging matrices (compile-time constants):
    #   csum[cc, r]  = 1/(N*H*W) if row r belongs to channel cc   -> (C, NC)
    #   bcast[r, cc] = 1         if row r belongs to channel cc   -> (NC, C)
    rows_chan = np.arange(nc) % c
    csum = jnp.asarray(
        (np.arange(c)[:, None] == rows_chan[None, :]).astype(np.float32)
        / float(n * hw))
    bcast = jnp.asarray(
        (rows_chan[:, None] == np.arange(c)[None, :]).astype(np.float32))

    # Resident VMEM footprint (matrices + gamma/beta + scratch), plus margin.
    fixed = 4 * (2 * nc * c + 6 * nc) + (64 << 10)

    hw_p128 = ((hw + 127) // 128) * 128

    def _pad_to(arr, hw_target):
        if hw_target == hw:
            return arr
        return jnp.pad(arr, ((0, 0), (0, hw_target - hw)))

    # ---------- single-pass fast path: whole slab resident in VMEM ----------
    slab_bytes = nc * hw_p128 * (x_bytes + out_bytes + 4)   # in + out + f32 temp
    if (not force_tiled) and (slab_bytes + fixed <= _VMEM_BUDGET):
        xin = _pad_to(x2d, hw_p128)
        y2d = pl.pallas_call(
            _make_single_pass_kernel(float(eps)),
            out_shape=jax.ShapeDtypeStruct((nc, hw_p128), out_dtype),
            in_specs=[pl.BlockSpec(memory_space=pltpu.MemorySpace.VMEM)] * 5,
            out_specs=pl.BlockSpec(memory_space=pltpu.MemorySpace.VMEM),
            compiler_params=pltpu.CompilerParams(
                vmem_limit_bytes=_VMEM_LIMIT),
        )(g_col, b_col, csum, bcast, xin)
        if hw_p128 != hw:
            y2d = y2d[:, :hw]
        return y2d.reshape(n, c, h, w)

    # ---------- two-phase tiled path ----------
    # Lane tile derived from the VMEM budget: double-buffered x + out blocks
    # plus an f32 upcast temp, clipped to [128, 2048] lanes.
    per_lane = nc * (2 * x_bytes + 2 * out_bytes + 4)
    tl_budget = max(128, (_VMEM_BUDGET - fixed) // per_lane)
    tl = int(min(2048, tl_budget, hw_p128))
    tl = max(128, (tl // 128) * 128)
    if lane_tile is not None:
        assert lane_tile % 128 == 0, "lane_tile must be a multiple of 128"
        tl = int(lane_tile)

    nblk = -(-hw // tl)            # ceil
    hw_padded = nblk * tl
    xin = _pad_to(x2d, hw_padded)

    y2d = pl.pallas_call(
        _make_tiled_kernel(float(eps)),
        out_shape=jax.ShapeDtypeStruct((nc, hw_padded), out_dtype),
        grid=(2, nblk),
        in_specs=[
            pl.BlockSpec(memory_space=pltpu.MemorySpace.VMEM),   # gamma col (resident)
            pl.BlockSpec(memory_space=pltpu.MemorySpace.VMEM),   # beta  col (resident)
            pl.BlockSpec(memory_space=pltpu.MemorySpace.VMEM),   # csum  (resident)
            pl.BlockSpec(memory_space=pltpu.MemorySpace.VMEM),   # bcast (resident)
            pl.BlockSpec((nc, tl), lambda p, b: (0, b)),         # x blocks
        ],
        # Output block only advances during phase 1, so HBM only ever sees the
        # final normalized data and every store is lane-dense/unmasked.
        out_specs=pl.BlockSpec((nc, tl), lambda p, b: (0, b * p)),
        scratch_shapes=[
            pltpu.VMEM((nc, 1), jnp.float32),   # per-row sum
            pltpu.VMEM((nc, 1), jnp.float32),   # per-row sum of squares
            pltpu.VMEM((nc, 1), jnp.float32),   # fused per-row scale
            pltpu.VMEM((nc, 1), jnp.float32),   # fused per-row shift
        ],
        compiler_params=pltpu.CompilerParams(
            # Both axes carry scratch state (global BN reduction) -> arbitrary.
            dimension_semantics=("arbitrary", "arbitrary"),
            vmem_limit_bytes=_VMEM_LIMIT,
        ),
    )(g_col, b_col, csum, bcast, xin)

    if hw_padded != hw:
        y2d = y2d[:, :hw]
    return y2d.reshape(n, c, h, w)


def conditional_batch_norm_2d_reference(x, class_id, gamma_weight, beta_weight,
                                        eps=1e-5):
    """Pure-JAX reference matching the PyTorch training-mode forward."""
    x = x.astype(jnp.float32)
    mean = jnp.mean(x, axis=(0, 2, 3), keepdims=True)
    var = jnp.mean(jnp.square(x - mean), axis=(0, 2, 3), keepdims=True)
    xn = (x - mean) / jnp.sqrt(var + eps)
    cls = jnp.reshape(class_id, (-1,))
    gamma = gamma_weight[cls][:, :, None, None]
    beta = beta_weight[cls][:, :, None, None]
    return gamma * xn + beta


if __name__ == "__main__":
    key = jax.random.PRNGKey(0)
    kx, kc, kg, kb, kx2 = jax.random.split(key, 5)

    n, c, h, w = 2, 4, 16, 16
    num_class = 10

    x = jax.random.normal(kx, (n, c, h, w), jnp.float32)        # NCHW, PyTorch-style
    class_id = jax.random.randint(kc, (n,), 0, num_class)

    # Module default init: gamma_embed.weight = ones, beta_embed.weight = zeros.
    gamma_w = jnp.ones((num_class, c), jnp.float32)
    beta_w = jnp.zeros((num_class, c), jnp.float32)

    # 1) default dispatch (single-pass fast path), identity affine.
    y = jax.block_until_ready(conditional_batch_norm_2d(x, class_id, gamma_w, beta_w))
    assert y.shape == (n, c, h, w), y.shape
    assert bool(jnp.all(jnp.isfinite(y)))
    y_ref = conditional_batch_norm_2d_reference(x, class_id, gamma_w, beta_w)
    assert bool(jnp.allclose(y, y_ref, atol=1e-3, rtol=1e-3)), \
        float(jnp.max(jnp.abs(y - y_ref)))

    # 2) non-trivial embedding tables (exercises the class-conditional path).
    gamma_w2 = 1.0 + 0.1 * jax.random.normal(kg, (num_class, c), jnp.float32)
    beta_w2 = 0.1 * jax.random.normal(kb, (num_class, c), jnp.float32)
    y2 = jax.block_until_ready(
        conditional_batch_norm_2d(x, class_id, gamma_w2, beta_w2))
    y2_ref = conditional_batch_norm_2d_reference(x, class_id, gamma_w2, beta_w2)
    assert bool(jnp.allclose(y2, y2_ref, atol=1e-3, rtol=1e-3)), \
        float(jnp.max(jnp.abs(y2 - y2_ref)))

    # 3) forced two-phase tiled path (exercises accumulator + fused FMA grid).
    y3 = jax.block_until_ready(conditional_batch_norm_2d(
        x, class_id, gamma_w2, beta_w2, force_tiled=True, lane_tile=128))
    assert bool(jnp.allclose(y3, y2_ref, atol=1e-3, rtol=1e-3)), \
        float(jnp.max(jnp.abs(y3 - y2_ref)))

    # 4) spatial size not a multiple of 128 (exercises zero padding), both paths.
    x4 = jax.random.normal(kx2, (n, c, 10, 10), jnp.float32)
    y4 = jax.block_until_ready(
        conditional_batch_norm_2d(x4, class_id, gamma_w2, beta_w2))
    y4_ref = conditional_batch_norm_2d_reference(x4, class_id, gamma_w2, beta_w2)
    assert bool(jnp.allclose(y4, y4_ref, atol=1e-3, rtol=1e-3)), \
        float(jnp.max(jnp.abs(y4 - y4_ref)))
    y4t = jax.block_until_ready(conditional_batch_norm_2d(
        x4, class_id, gamma_w2, beta_w2, force_tiled=True, lane_tile=128))
    assert bool(jnp.allclose(y4t, y4_ref, atol=1e-3, rtol=1e-3)), \
        float(jnp.max(jnp.abs(y4t - y4_ref)))

    # 5) bf16 activations: native-dtype HBM I/O with in-kernel upcast, f32 math.
    xb = x.astype(jnp.bfloat16)
    y5 = jax.block_until_ready(
        conditional_batch_norm_2d(xb, class_id, gamma_w2, beta_w2))
    y5_ref = conditional_batch_norm_2d_reference(
        xb.astype(jnp.float32), class_id, gamma_w2, beta_w2)
    assert bool(jnp.allclose(y5, y5_ref, atol=2e-2, rtol=2e-2)), \
        float(jnp.max(jnp.abs(y5 - y5_ref)))

    print("KERNEL_OK")
</pallas_src>

<mosaic_0001>
module attributes {stable_mosaic.version = 11 : i64} {
  func.func @kernel(%arg0: memref<8x1xf32, #tpu.memory_space<vmem>>, %arg1: memref<8x1xf32, #tpu.memory_space<vmem>>, %arg2: memref<4x8xf32, #tpu.memory_space<vmem>>, %arg3: memref<8x4xf32, #tpu.memory_space<vmem>>, %arg4: memref<8x256xf32, #tpu.memory_space<vmem>>, %arg5: memref<8x256xf32, #tpu.memory_space<vmem>>) attributes {dimension_semantics = [], scalar_prefetch = 0 : i64, scratch_operands = 0 : i64, tpu.core_type = #tpu.core_type<tc>} {
    %c0 = arith.constant 0 : index
    %c0_0 = arith.constant 0 : index
    %0 = vector.load %arg4[%c0, %c0_0] : memref<8x256xf32, #tpu.memory_space<vmem>>, vector<8x256xf32>
    %cst = arith.constant dense<0.000000e+00> : vector<8xf32>
    %1 = vector.multi_reduction <add>, %0, %cst [1] : vector<8x256xf32> to vector<8xf32>
    %2 = vector.shape_cast %1 : vector<8xf32> to vector<8x1xf32>
    %3 = arith.mulf %0, %0 : vector<8x256xf32>
    %cst_1 = arith.constant dense<0.000000e+00> : vector<8xf32>
    %4 = vector.multi_reduction <add>, %3, %cst_1 [1] : vector<8x256xf32> to vector<8xf32>
    %5 = vector.shape_cast %4 : vector<8xf32> to vector<8x1xf32>
    %c0_2 = arith.constant 0 : index
    %c0_3 = arith.constant 0 : index
    %6 = vector.load %arg3[%c0_2, %c0_3] : memref<8x4xf32, #tpu.memory_space<vmem>>, vector<8x4xf32>
    %c0_4 = arith.constant 0 : index
    %c0_5 = arith.constant 0 : index
    %7 = vector.load %arg2[%c0_4, %c0_5] : memref<4x8xf32, #tpu.memory_space<vmem>>, vector<4x8xf32>
    %cst_6 = arith.constant dense<0.000000e+00> : vector<4x1xf32>
    %8 = tpu.matmul %7, %2, %cst_6 {dimension_numbers = #tpu.dot_dimension_numbers<[1], [0], [0], [1], [0, 0, 1, 1], [], []>} : vector<4x8xf32>, vector<8x1xf32>, vector<4x1xf32> -> vector<4x1xf32>
    %cst_7 = arith.constant dense<0.000000e+00> : vector<8x1xf32>
    %9 = tpu.matmul %6, %8, %cst_7 {dimension_numbers = #tpu.dot_dimension_numbers<[1], [0], [0], [1], [0, 0, 1, 1], [], []>} : vector<8x4xf32>, vector<4x1xf32>, vector<8x1xf32> -> vector<8x1xf32>
    %c0_8 = arith.constant 0 : index
    %c0_9 = arith.constant 0 : index
    %10 = vector.load %arg3[%c0_8, %c0_9] : memref<8x4xf32, #tpu.memory_space<vmem>>, vector<8x4xf32>
    %c0_10 = arith.constant 0 : index
    %c0_11 = arith.constant 0 : index
    %11 = vector.load %arg2[%c0_10, %c0_11] : memref<4x8xf32, #tpu.memory_space<vmem>>, vector<4x8xf32>
    %cst_12 = arith.constant dense<0.000000e+00> : vector<4x1xf32>
    %12 = tpu.matmul %11, %5, %cst_12 {dimension_numbers = #tpu.dot_dimension_numbers<[1], [0], [0], [1], [0, 0, 1, 1], [], []>} : vector<4x8xf32>, vector<8x1xf32>, vector<4x1xf32> -> vector<4x1xf32>
    %cst_13 = arith.constant dense<0.000000e+00> : vector<8x1xf32>
    %13 = tpu.matmul %10, %12, %cst_13 {dimension_numbers = #tpu.dot_dimension_numbers<[1], [0], [0], [1], [0, 0, 1, 1], [], []>} : vector<8x4xf32>, vector<4x1xf32>, vector<8x1xf32> -> vector<8x1xf32>
    %14 = arith.mulf %9, %9 : vector<8x1xf32>
    %15 = arith.subf %13, %14 : vector<8x1xf32>
    %cst_14 = arith.constant 9.99999974E-6 : f32
    %16 = vector.broadcast %cst_14 : f32 to vector<8x1xf32>
    %17 = arith.addf %15, %16 : vector<8x1xf32>
    %18 = math.rsqrt %17 : vector<8x1xf32>
    %c0_15 = arith.constant 0 : index
    %c0_16 = arith.constant 0 : index
    %19 = vector.load %arg0[%c0_15, %c0_16] : memref<8x1xf32, #tpu.memory_space<vmem>>, vector<8x1xf32>
    %20 = arith.mulf %19, %18 : vector<8x1xf32>
    %c0_17 = arith.constant 0 : index
    %c0_18 = arith.constant 0 : index
    %21 = vector.load %arg1[%c0_17, %c0_18] : memref<8x1xf32, #tpu.memory_space<vmem>>, vector<8x1xf32>
    %22 = arith.mulf %9, %20 : vector<8x1xf32>
    %23 = arith.subf %21, %22 : vector<8x1xf32>
    %24 = vector.broadcast %20 : vector<8x1xf32> to vector<8x256xf32>
    %25 = arith.mulf %0, %24 : vector<8x256xf32>
    %26 = vector.broadcast %23 : vector<8x1xf32> to vector<8x256xf32>
    %27 = arith.addf %25, %26 : vector<8x256xf32>
    %c0_19 = arith.constant 0 : index
    %c0_20 = arith.constant 0 : index
    %28 = vector.load %arg5[%c0_19, %c0_20] : memref<8x256xf32, #tpu.memory_space<vmem>>, vector<8x256xf32>
    tpu.vector_store %arg5[%c0_19, %c0_20], %27 {strides = array<i32>} : memref<8x256xf32, #tpu.memory_space<vmem>>, vector<8x256xf32>,
    return
  }
}

</mosaic_0001>

<bundles_post_ra>
// kernel: tpu_custom_call.1
= control target key start
LH: loop header
LB: loop body
LE: loop exit
PB: predicated region body
PF: predicated region fallthrough
CT: control target
= control target key end

     0   :  { %s490_s0 = inlined_call_operand.vmem [shape: f32[8,1], index: 0, kind: input, shape index: {}]   ;;  %s491_s1 = inlined_call_operand.vmem [shape: f32[8,1], index: 1, kind: input, shape index: {}]   ;;  %s492_s2 = inlined_call_operand.vmem [shape: f32[4,8], index: 2, kind: input, shape index: {}]   ;;  %s493_s3 = inlined_call_operand.vmem [shape: f32[8,4], index: 3, kind: input, shape index: {}]   ;;  %s494_s4 = inlined_call_operand.vmem [shape: f32[8,256], index: 4, kind: input, shape index: {}]   ;;  %s495_s5 = inlined_call_operand.hbm [shape: f32[8,256], index: 5, kind: output, shape index: {}]  }
   0x1   :  { %v21_v0 = vld [vmem:[%s494_s4] sm:$0xff]  ;;  %v22_v1 = vld [vmem:[%s494_s4 + $0x8] sm:$0xff] }
   0x2   :  { %10 = vsyncpa [#allocation3], 0  ;;  %v23_v2 = vadd.f32 %v22_v1, %v21_v0  ;;  %v26_v3 = vmul.f32 %v21_v0, %v21_v0  ;;  %v27_v4 = vmul.f32 %v22_v1, %v22_v1  ;;  %v431_v5 = vmov 0.0   ;;  %v32_v7 = vld [vmem:[%s492_s2] sm:$0xf]  ;;  %s434_s27 = smov [#allocation2]  }
   0x3   :  { %381 = vmatprep.subr.mxu0 %v431_v5  ;;  %386 = vmatprep.subr.mxu1 %v431_v5  ;;  %vm432_vm0 = vmmov 0   ;;  %vm33_vm1 = vcmask 64512   ;;  %vm111_vm2 = vcmask 1043456   ;;  %v31_v10 = vld [vmem:[%s493_s3] sm:$0xff]  ;;  %vm107_vm3 = vcmask 31744   ;;  %s359_s28 = sshll.u32 %s434_s27, 4  ;;  %s360_s28 = int_to_ptr.vmem [resolvable:$true] %s359_s28 }
   0x4   :  { %24 = vadd.xlane.f32.xlu0 %v23_v2  ;;  %v28_v6 = vadd.f32 %v27_v4, %v26_v3  ;;  %383 = vmatprep.mubr.msk.f32.mxu0 %vm432_vm0, %v431_v5  ;;  %v433_v15 = vmov 0   ;;  %v332_v23 = vld [vmem:[%s490_s0] sm:$0xff]  ;;  %s409_s0 = scalar_lea.vmem %s360_s28, 256  ;;  %p414_p1 = scmp.lt.s32.totalorder %s360_s28, %s360_s28 }
   0x5   :  { %388 = vmatprep.mubr.msk.f32.mxu1 %vm432_vm0, %v431_v5  ;;  %405 = vset.pattern.permute.xlu1 %v433_v15  ;;  %v334_v26 = vld [vmem:[%s491_s1] sm:$0xff]  ;;  %p410_p0 = scmp.ne.s32.totalorder %s360_s28, %s409_s0  ;;  %p415_p2 = scmp.lt.s32.totalorder %s409_s0, %s409_s0 }
   0x6   :  { %406 = vset.pattern.permute.xlu0 %v433_v15 }
   0x7   :  { %p416_p3 = por %p415_p2, %p414_p1 }
   0x8   :  { %29 = vadd.xlane.f32.xlu0 %v28_v6 }
   0x9   :  { %p417_p4 = pnand %p416_p3, %p410_p0 }
  0x8d   :  { %v25_v8 = vpop.xlane.xlu0 %24 }
  0x8e   :  { %382 = vmatpush3.msra.mxu0 %v25_v8 }
  0x8f   :  { %384 = vmatmul.mubr.msk.f32.vlgmr.msra.gmra.mxu0 %vm33_vm1, %v32_v7  ;;  %391 = vmatprep.subr.mxu0 %v431_v5 }
  0x90   :  { %393 = vmatprep.mubr.msk.f32.mxu0 %vm432_vm0, %v431_v5 }
  0x91   :  { %v30_v9 = vpop.xlane.xlu0 %29 }
  0x92   :  { %392 = vmatpush3.msra.mxu0 %v30_v9 }
  0x93   :  { %394 = vmatmul.mubr.msk.f32.vlgmr.msra.gmra.mxu0 %vm33_vm1, %v32_v7 }
 0x14f   :  { %v103_v11 = vpop.f32.mrf.mxu0 }
 0x150   :  { %387 = vmatpush3.msk.msra.mxu1 %vm111_vm2, %v103_v11 }
 0x151   :  { %v385_v12 = vpop.f32.mrf.mxu0  ;;  %389 = vmatmul.mubr.msk.f32.vlgmr.msra.gmra.mxu1 %vm107_vm3, %v31_v10  ;;  %396 = vmatprep.subr.mxu1 %v431_v5 }
 0x152   :  { %398 = vmatprep.mubr.msk.f32.mxu1 %vm432_vm0, %v431_v5 }
 0x153   :  { %v251_v13 = vpop.f32.mrf.mxu0 }
 0x154   :  { %397 = vmatpush3.msk.msra.mxu1 %vm111_vm2, %v251_v13 }
 0x155   :  { %v395_v14 = vpop.f32.mrf.mxu0  ;;  %399 = vmatmul.mubr.msk.f32.vlgmr.msra.gmra.mxu1 %vm107_vm3, %v31_v10 }
 0x211   :  { %v181_v16 = vpop.f32.mrf.mxu1 }
 0x212   :  { %v328_v18 = vmul.f32 %v181_v16, %v181_v16 }
 0x213   :  { %v390_v17 = vpop.f32.mrf.mxu1 }
 0x215   :  { %v324_v19 = vpop.f32.mrf.mxu1 }
 0x216   :  { %v329_v20 = vsub.f32 %v324_v19, %v328_v18 }
 0x217   :  { %v400_v21 = vpop.f32.mrf.mxu1 }
 0x218   :  { %v330_v22 = vadd.f32 1e-05, %v329_v20 }
 0x21a   :  { %407 = vrsqrt.f32 %v330_v22 }
 0x227   :  { %v408_v24 = vpop.eup %407 }
 0x228   :  { %v333_v25 = vmul.f32 %v408_v24, %v332_v23 }
 0x22a   :  { %339 = vperm.xlu1 %405, %v333_v25   ;;  %v335_v27 = vmul.f32 %v333_v25, %v181_v16 }
 0x22c   :  { %v336_v28 = vsub.f32 %v334_v26, %v335_v27 }
 0x22e   :  { %346 = vperm.xlu1 %405, %v336_v28  }
 0x2a5   :  { %v340_v29 = vpop.permute.xlu1 %339 }
 0x2a6   :  { %v342_v30 = vmul.f32 %v340_v29, %v21_v0  ;;  %v343_v31 = vmul.f32 %v340_v29, %v22_v1 }
 0x2a9   :  { %v347_v32 = vpop.permute.xlu1 %346 }
 0x2aa   :  { %v349_v33 = vadd.f32 %v347_v32, %v342_v30  ;;  %v350_v34 = vadd.f32 %v347_v32, %v343_v31 }
 0x2ac   :  { %351 = vst [vmem:[#allocation2] sm:$0xff] %v349_v33  ;;  %352 = vst [vmem:[#allocation2 + $0x8] sm:$0xff] %v350_v34 }
 0x2ad   :  { %420 = shalt.err (!%p417_p4)
}
 0x2ae   :  { %362 = dma.vmem_to_hbm [thread:$0]  %s360_s28, 256, %s495_s5, [#allocation3]  }
 0x2af   :  { %429 = dma.done.wait [#allocation3], 256  }
 0x2b0   :  { %430 = vsyncadd [#allocation3], 4294967040 }
 0x2b1   :  { %366 = vsyncpa [#allocation3], 1 }

</bundles_post_ra>
